<compile_context>
chip_gen: v7x
topology: tpu7x:2x2x1
jax: 0.10.0
libtpu: 0.0.40
codegen_flags: <defaults>
</compile_context>

<pallas_src>
import functools

import jax
import jax.numpy as jnp
from jax.experimental import pallas as pl
from jax.experimental.pallas import tpu as pltpu

KSIZE = 3
BN_EPS = 1e-5
LANE = 128


def _round_up(x, m):
    return ((x + m - 1) // m) * m


def _row_tile(m):
    for t in (1024, 512, 256, 128, 64, 32, 16, 8):
        if m % t == 0:
            return t
    return m  # fall back to a single full-array block


# ---------------- pass 1: BN batch statistics -> fused scale/shift ----------------
def bn_scale_shift_kernel(gamma_ref, beta_ref, x_ref, scale_ref, shift_ref, *, inv_m):
    # gamma_ref/beta_ref: (1, Cp) f32 (constant blocks, DMA skipped after first step)
    # x_ref:              (TM, Cp) f32 row tile
    # scale_ref/shift_ref:(1, Cp)  f32 resident accumulators, finalized on the last step.
    i = pl.program_id(0)

    @pl.when(i == 0)
    def _():
        scale_ref[...] = jnp.zeros_like(scale_ref)
        shift_ref[...] = jnp.zeros_like(shift_ref)

    x = x_ref[...]
    scale_ref[...] += jnp.sum(x, axis=0, keepdims=True)       # running sum
    shift_ref[...] += jnp.sum(x * x, axis=0, keepdims=True)   # running sum of squares

    @pl.when(i == pl.num_programs(0) - 1)
    def _():
        mean = scale_ref[...] * inv_m
        var = shift_ref[...] * inv_m - mean * mean             # biased (train-mode BN)
        g = gamma_ref[...] * jax.lax.rsqrt(var + BN_EPS)       # gamma * inv_std
        scale_ref[...] = g
        shift_ref[...] = beta_ref[...] - mean * g


# ---------------- pass 2: BN-apply + Mish + 3x3 same-padding conv ----------------
def convblock_kernel(x_ref, scale_ref, shift_ref, w_ref, b_ref, o_ref,
                     act_ref, patch_ref):
    # x_ref:     (1, H, W, Cp)   f32
    # scale_ref: (1, Cp)         f32   gamma * rsqrt(var + eps)
    # shift_ref: (1, Cp)         f32   beta - mean * scale
    # w_ref:     (9*Cp, TCO)     bf16  rows ordered (kh, kw, cin)
    # b_ref:     (1, TCO)        f32
    # o_ref:     (1, H, W, TCO)  f32
    # act_ref:   (H+2, W+2, Cp)  f32   scratch: activated, spatially zero-padded plane
    # patch_ref: (H*W, 9*Cp)     bf16  scratch: im2col matrix
    co = pl.program_id(1)
    _, H, W, Cp = x_ref.shape

    @pl.when(co == 0)
    def _():
        # BN apply + Mish, computed once per batch element (f32 elementwise; v5e-safe).
        x = x_ref[...].reshape(H * W, Cp)
        y = x * scale_ref[...] + shift_ref[...]
        u = jnp.exp(-jnp.abs(y))                       # single EUP transcendental
        pos = y >= 0.0
        num = jnp.where(pos, 1.0 + 2.0 * u, u * (2.0 + u))
        den = jnp.where(pos, 1.0 + 2.0 * u + 2.0 * u * u, 2.0 + u * (2.0 + u))
        act = y * num / den                            # mish(y) = y*tanh(softplus(y))

        # Zero only the 1-pixel border of the padded scratch (not the full buffer).
        act_ref[0:1, :, :] = jnp.zeros((1, W + 2, Cp), jnp.float32)
        act_ref[H + 1:H + 2, :, :] = jnp.zeros((1, W + 2, Cp), jnp.float32)
        act_ref[:, 0:1, :] = jnp.zeros((H + 2, 1, Cp), jnp.float32)
        act_ref[:, W + 1:W + 2, :] = jnp.zeros((H + 2, 1, Cp), jnp.float32)
        act_ref[1:H + 1, 1:W + 1, :] = act.reshape(H, W, Cp)

        # im2col: (H*W, 9*Cp) with tap-major (kh, kw, cin) ordering to match w_ref rows.
        for kh in range(KSIZE):
            for kw in range(KSIZE):
                tap = kh * KSIZE + kw
                patch = act_ref[kh:kh + H, kw:kw + W, :].reshape(H * W, Cp)
                patch_ref[:, tap * Cp:(tap + 1) * Cp] = patch.astype(jnp.bfloat16)

    # One fused MXU matmul per output-channel tile: bf16 inputs, f32 accumulation.
    acc = jnp.dot(patch_ref[...], w_ref[...], preferred_element_type=jnp.float32)
    acc = acc + b_ref[...]
    o_ref[...] = acc.reshape(1, H, W, acc.shape[-1]).astype(o_ref.dtype)


def conv_block(x_nchw, gamma, beta, weight_oihw, bias):
    """ConvBlock forward (training-mode BN). x_nchw: (N, Cin, H, W) -> (N, Cout, H, W)."""
    N, Cin, H, W = x_nchw.shape
    Cout = weight_oihw.shape[0]
    Cp_in = _round_up(Cin, LANE)
    Cp_out = _round_up(Cout, LANE)
    TCO = LANE
    n_co = Cp_out // TCO
    M = N * H * W

    # NCHW -> NHWC, channels padded to a lane-dense multiple of 128.
    x_nhwc = jnp.transpose(x_nchw, (0, 2, 3, 1)).astype(jnp.float32)
    x_p = jnp.pad(x_nhwc, ((0, 0), (0, 0), (0, 0), (0, Cp_in - Cin)))
    x2d = x_p.reshape(M, Cp_in)

    gamma_p = jnp.pad(gamma.astype(jnp.float32), (0, Cp_in - Cin)).reshape(1, Cp_in)
    beta_p = jnp.pad(beta.astype(jnp.float32), (0, Cp_in - Cin)).reshape(1, Cp_in)

    # ---- pass 1: per-channel batch statistics + fused scale/shift finalize ----
    TM = _row_tile(M)
    scale, shift = pl.pallas_call(
        functools.partial(bn_scale_shift_kernel, inv_m=1.0 / M),
        out_shape=(jax.ShapeDtypeStruct((1, Cp_in), jnp.float32),
                   jax.ShapeDtypeStruct((1, Cp_in), jnp.float32)),
        grid=(M // TM,),
        in_specs=[pl.BlockSpec((1, Cp_in), lambda i: (0, 0)),
                  pl.BlockSpec((1, Cp_in), lambda i: (0, 0)),
                  pl.BlockSpec((TM, Cp_in), lambda i: (i, 0))],
        out_specs=[pl.BlockSpec((1, Cp_in), lambda i: (0, 0)),
                   pl.BlockSpec((1, Cp_in), lambda i: (0, 0))],
        compiler_params=pltpu.CompilerParams(
            dimension_semantics=("arbitrary",),
            vmem_limit_bytes=48 * 1024 * 1024),
    )(gamma_p, beta_p, x2d)

    # Weights: OIHW -> (KH, KW, Cin, Cout), channel-padded, flattened for im2col; bf16.
    w_hwio = jnp.transpose(weight_oihw.astype(jnp.float32), (2, 3, 1, 0))
    w_p = jnp.pad(w_hwio, ((0, 0), (0, 0), (0, Cp_in - Cin), (0, Cp_out - Cout)))
    w_mat = w_p.reshape(KSIZE * KSIZE * Cp_in, Cp_out).astype(jnp.bfloat16)
    b_p = jnp.pad(bias.astype(jnp.float32), (0, Cp_out - Cout)).reshape(1, Cp_out)

    # ---- pass 2: BN-apply + Mish + conv, gridded over (batch, Cout tiles) ----
    out_p = pl.pallas_call(
        convblock_kernel,
        out_shape=jax.ShapeDtypeStruct((N, H, W, Cp_out), jnp.float32),
        grid=(N, n_co),
        in_specs=[
            pl.BlockSpec((1, H, W, Cp_in), lambda n, co: (n, 0, 0, 0)),
            pl.BlockSpec((1, Cp_in), lambda n, co: (0, 0)),
            pl.BlockSpec((1, Cp_in), lambda n, co: (0, 0)),
            pl.BlockSpec((KSIZE * KSIZE * Cp_in, TCO), lambda n, co: (0, co)),
            pl.BlockSpec((1, TCO), lambda n, co: (0, co)),
        ],
        out_specs=pl.BlockSpec((1, H, W, TCO), lambda n, co: (n, 0, 0, co)),
        scratch_shapes=[
            pltpu.VMEM((H + 2, W + 2, Cp_in), jnp.float32),
            pltpu.VMEM((H * W, KSIZE * KSIZE * Cp_in), jnp.bfloat16),
        ],
        compiler_params=pltpu.CompilerParams(
            dimension_semantics=("parallel", "arbitrary"),   # batch across megacore TCs
            vmem_limit_bytes=48 * 1024 * 1024),              # fits v7x's 64 MiB/TC
    )(x_p, scale, shift, w_mat, b_p)

    # Drop channel padding, back to NCHW.
    return jnp.transpose(out_p[..., :Cout], (0, 3, 1, 2))


def conv_block_ref(x_nchw, gamma, beta, weight_oihw, bias):
    """Pure-JAX reference mirroring PyTorch ConvBlock.forward (train-mode BN).
    The conv uses bf16 inputs with f32 accumulation to match the kernel's MXU dtypes."""
    x = x_nchw.astype(jnp.float32)
    mean = jnp.mean(x, axis=(0, 2, 3), keepdims=True)
    var = jnp.var(x, axis=(0, 2, 3), keepdims=True)   # biased
    xhat = (x - mean) * jax.lax.rsqrt(var + BN_EPS)
    y = xhat * gamma.reshape(1, -1, 1, 1) + beta.reshape(1, -1, 1, 1)
    act = y * jnp.tanh(jax.nn.softplus(y))
    out = jax.lax.conv_general_dilated(
        act.astype(jnp.bfloat16), weight_oihw.astype(jnp.bfloat16),
        window_strides=(1, 1), padding=((1, 1), (1, 1)),
        dimension_numbers=("NCHW", "OIHW", "NCHW"),
        preferred_element_type=jnp.float32)
    return out + bias.reshape(1, -1, 1, 1)


if __name__ == "__main__":
    key = jax.random.PRNGKey(0)
    kx, kw, kb = jax.random.split(key, 3)

    N, Cin, H, W = 2, 4, 16, 16
    Cout = 8

    # Example input (PyTorch NCHW convention).
    x = jax.random.normal(kx, (N, Cin, H, W), jnp.float32)

    # Deterministic parameter init (shapes from the module __init__).
    gamma = jnp.ones((Cin,), jnp.float32)     # BatchNorm2d.weight init
    beta = jnp.zeros((Cin,), jnp.float32)     # BatchNorm2d.bias init
    fan_in = Cin * KSIZE * KSIZE
    bound = 1.0 / (fan_in ** 0.5)
    weight = jax.random.uniform(kw, (Cout, Cin, KSIZE, KSIZE), jnp.float32,
                                minval=-bound, maxval=bound)
    bias = jax.random.uniform(kb, (Cout,), jnp.float32,
                              minval=-bound, maxval=bound)

    out = jax.block_until_ready(conv_block(x, gamma, beta, weight, bias))
    ref = conv_block_ref(x, gamma, beta, weight, bias)

    assert out.shape == (N, Cout, H, W)
    max_err = float(jnp.max(jnp.abs(out - ref)))
    assert jnp.allclose(out, ref, atol=2e-3, rtol=2e-3), f"max abs err {max_err}"
    print("KERNEL_OK")
</pallas_src>

<mosaic_0001>
module attributes {stable_mosaic.version = 11 : i64} {
  func.func @bn_scale_shift_kernel(%arg0: i32, %arg1: memref<1x128xf32, #tpu.memory_space<vmem>>, %arg2: memref<1x128xf32, #tpu.memory_space<vmem>>, %arg3: memref<512x128xf32, #tpu.memory_space<vmem>>, %arg4: memref<1x128xf32, #tpu.memory_space<vmem>>, %arg5: memref<1x128xf32, #tpu.memory_space<vmem>>) attributes {dimension_semantics = [#tpu.dimension_semantics<arbitrary>], iteration_bounds = array<i64: 1>, scalar_prefetch = 0 : i64, scratch_operands = 0 : i64, tpu.core_type = #tpu.core_type<tc>, window_params = [{pipeline_mode = #tpu.pipeline_mode<synchronous>, transform_indices = @transform_0, window_bounds = array<i64: 1, 128>}, {pipeline_mode = #tpu.pipeline_mode<synchronous>, transform_indices = @transform_1, window_bounds = array<i64: 1, 128>}, {transform_indices = @transform_2, window_bounds = array<i64: 512, 128>}, {pipeline_mode = #tpu.pipeline_mode<synchronous>, transform_indices = @transform_3, window_bounds = array<i64: 1, 128>}, {pipeline_mode = #tpu.pipeline_mode<synchronous>, transform_indices = @transform_4, window_bounds = array<i64: 1, 128>}]} {
    %c0_i32 = arith.constant 0 : i32
    %0 = arith.cmpi eq, %arg0, %c0_i32 : i32
    %1 = arith.extui %0 : i1 to i32
    %c0_i32_0 = arith.constant 0 : i32
    %2 = arith.cmpi ne, %1, %c0_i32_0 : i32
    scf.if %2 {
      %cst_13 = arith.constant 0.000000e+00 : f32
      %18 = vector.broadcast %cst_13 : f32 to vector<1x128xf32>
      %c0_14 = arith.constant 0 : index
      %c0_15 = arith.constant 0 : index
      %19 = vector.load %arg4[%c0_14, %c0_15] : memref<1x128xf32, #tpu.memory_space<vmem>>, vector<1x128xf32>
      tpu.vector_store %arg4[%c0_14, %c0_15], %18 {strides = array<i32>} : memref<1x128xf32, #tpu.memory_space<vmem>>, vector<1x128xf32>,
      %cst_16 = arith.constant 0.000000e+00 : f32
      %20 = vector.broadcast %cst_16 : f32 to vector<1x128xf32>
      %c0_17 = arith.constant 0 : index
      %c0_18 = arith.constant 0 : index
      %21 = vector.load %arg5[%c0_17, %c0_18] : memref<1x128xf32, #tpu.memory_space<vmem>>, vector<1x128xf32>
      tpu.vector_store %arg5[%c0_17, %c0_18], %20 {strides = array<i32>} : memref<1x128xf32, #tpu.memory_space<vmem>>, vector<1x128xf32>,
    } else {
    }
    %c0 = arith.constant 0 : index
    %c0_1 = arith.constant 0 : index
    %3 = vector.load %arg3[%c0, %c0_1] : memref<512x128xf32, #tpu.memory_space<vmem>>, vector<512x128xf32>
    %c0_2 = arith.constant 0 : index
    %c0_3 = arith.constant 0 : index
    %4 = vector.load %arg4[%c0_2, %c0_3] : memref<1x128xf32, #tpu.memory_space<vmem>>, vector<1x128xf32>
    %cst = arith.constant dense<0.000000e+00> : vector<128xf32>
    %5 = vector.multi_reduction <add>, %3, %cst [0] : vector<512x128xf32> to vector<128xf32>
    %6 = vector.shape_cast %5 : vector<128xf32> to vector<1x128xf32>
    %7 = arith.addf %4, %6 : vector<1x128xf32>
    %c0_4 = arith.constant 0 : index
    %c0_5 = arith.constant 0 : index
    %8 = vector.load %arg4[%c0_4, %c0_5] : memref<1x128xf32, #tpu.memory_space<vmem>>, vector<1x128xf32>
    tpu.vector_store %arg4[%c0_4, %c0_5], %7 {strides = array<i32>} : memref<1x128xf32, #tpu.memory_space<vmem>>, vector<1x128xf32>,
    %c0_6 = arith.constant 0 : index
    %c0_7 = arith.constant 0 : index
    %9 = vector.load %arg5[%c0_6, %c0_7] : memref<1x128xf32, #tpu.memory_space<vmem>>, vector<1x128xf32>
    %10 = arith.mulf %3, %3 : vector<512x128xf32>
    %cst_8 = arith.constant dense<0.000000e+00> : vector<128xf32>
    %11 = vector.multi_reduction <add>, %10, %cst_8 [0] : vector<512x128xf32> to vector<128xf32>
    %12 = vector.shape_cast %11 : vector<128xf32> to vector<1x128xf32>
    %13 = arith.addf %9, %12 : vector<1x128xf32>
    %c0_9 = arith.constant 0 : index
    %c0_10 = arith.constant 0 : index
    %14 = vector.load %arg5[%c0_9, %c0_10] : memref<1x128xf32, #tpu.memory_space<vmem>>, vector<1x128xf32>
    tpu.vector_store %arg5[%c0_9, %c0_10], %13 {strides = array<i32>} : memref<1x128xf32, #tpu.memory_space<vmem>>, vector<1x128xf32>,
    %c0_i32_11 = arith.constant 0 : i32
    %15 = arith.cmpi eq, %arg0, %c0_i32_11 : i32
    %16 = arith.extui %15 : i1 to i32
    %c0_i32_12 = arith.constant 0 : i32
    %17 = arith.cmpi ne, %16, %c0_i32_12 : i32
    scf.if %17 {
      %c0_13 = arith.constant 0 : index
      %c0_14 = arith.constant 0 : index
      %18 = vector.load %arg4[%c0_13, %c0_14] : memref<1x128xf32, #tpu.memory_space<vmem>>, vector<1x128xf32>
      %cst_15 = arith.constant 0.001953125 : f32
      %19 = vector.broadcast %cst_15 : f32 to vector<1x128xf32>
      %20 = arith.mulf %18, %19 : vector<1x128xf32>
      %c0_16 = arith.constant 0 : index
      %c0_17 = arith.constant 0 : index
      %21 = vector.load %arg5[%c0_16, %c0_17] : memref<1x128xf32, #tpu.memory_space<vmem>>, vector<1x128xf32>
      %cst_18 = arith.constant 0.001953125 : f32
      %22 = vector.broadcast %cst_18 : f32 to vector<1x128xf32>
      %23 = arith.mulf %21, %22 : vector<1x128xf32>
      %24 = arith.mulf %20, %20 : vector<1x128xf32>
      %25 = arith.subf %23, %24 : vector<1x128xf32>
      %c0_19 = arith.constant 0 : index
      %c0_20 = arith.constant 0 : index
      %26 = vector.load %arg1[%c0_19, %c0_20] : memref<1x128xf32, #tpu.memory_space<vmem>>, vector<1x128xf32>
      %cst_21 = arith.constant 9.99999974E-6 : f32
      %27 = vector.broadcast %cst_21 : f32 to vector<1x128xf32>
      %28 = arith.addf %25, %27 : vector<1x128xf32>
      %29 = math.rsqrt %28 : vector<1x128xf32>
      %30 = arith.mulf %26, %29 : vector<1x128xf32>
      %c0_22 = arith.constant 0 : index
      %c0_23 = arith.constant 0 : index
      %31 = vector.load %arg4[%c0_22, %c0_23] : memref<1x128xf32, #tpu.memory_space<vmem>>, vector<1x128xf32>
      tpu.vector_store %arg4[%c0_22, %c0_23], %30 {strides = array<i32>} : memref<1x128xf32, #tpu.memory_space<vmem>>, vector<1x128xf32>,
      %c0_24 = arith.constant 0 : index
      %c0_25 = arith.constant 0 : index
      %32 = vector.load %arg2[%c0_24, %c0_25] : memref<1x128xf32, #tpu.memory_space<vmem>>, vector<1x128xf32>
      %33 = arith.mulf %20, %30 : vector<1x128xf32>
      %34 = arith.subf %32, %33 : vector<1x128xf32>
      %c0_26 = arith.constant 0 : index
      %c0_27 = arith.constant 0 : index
      %35 = vector.load %arg5[%c0_26, %c0_27] : memref<1x128xf32, #tpu.memory_space<vmem>>, vector<1x128xf32>
      tpu.vector_store %arg5[%c0_26, %c0_27], %34 {strides = array<i32>} : memref<1x128xf32, #tpu.memory_space<vmem>>, vector<1x128xf32>,
    } else {
    }
    return
  }
  func.func @transform_0(%arg0: i32) -> (i32, i32) {
    %c0_i32 = arith.constant 0 : i32
    %c0_i32_0 = arith.constant 0 : i32
    %c0_i32_1 = arith.constant 0 : i32
    return %c0_i32, %c0_i32_0 : i32, i32
  }
  func.func @transform_1(%arg0: i32) -> (i32, i32) {
    %c0_i32 = arith.constant 0 : i32
    %c0_i32_0 = arith.constant 0 : i32
    %c0_i32_1 = arith.constant 0 : i32
    return %c0_i32, %c0_i32_0 : i32, i32
  }
  func.func @transform_2(%arg0: i32) -> (i32, i32) {
    %c0_i32 = arith.constant 0 : i32
    %c0_i32_0 = arith.constant 0 : i32
    return %arg0, %c0_i32 : i32, i32
  }
  func.func @transform_3(%arg0: i32) -> (i32, i32) {
    %c0_i32 = arith.constant 0 : i32
    %c0_i32_0 = arith.constant 0 : i32
    %c0_i32_1 = arith.constant 0 : i32
    return %c0_i32, %c0_i32_0 : i32, i32
  }
  func.func @transform_4(%arg0: i32) -> (i32, i32) {
    %c0_i32 = arith.constant 0 : i32
    %c0_i32_0 = arith.constant 0 : i32
    %c0_i32_1 = arith.constant 0 : i32
    return %c0_i32, %c0_i32_0 : i32, i32
  }
}

</mosaic_0001>

<bundles_post_ra>
// kernel: tpu_custom_call.1
= control target key start
LH: loop header
LB: loop body
LE: loop exit
PB: predicated region body
PF: predicated region fallthrough
CT: control target
= control target key end

     0   :  { %10 = vsyncpa [#allocation3], 0  ;;  %s565_s0 = inlined_call_operand.hbm [shape: f32[1,128], index: 0, kind: input, shape index: {}]   ;;  %s566_s1 = inlined_call_operand.vmem [shape: f32[1,128], index: 1, kind: input, shape index: {}]   ;;  %s567_s2 = inlined_call_operand.hbm [shape: f32[512,128], index: 2, kind: input, shape index: {}]   ;;  %s568_s3 = inlined_call_operand.hbm [shape: f32[1,128], index: 3, kind: output, shape index: {0}]   ;;  %s569_s4 = inlined_call_operand.hbm [shape: f32[1,128], index: 4, kind: output, shape index: {1}]  }
   0x1   :  { %11 = vsyncpa [#allocation6], 0 }
   0x2   :  { %12 = vsyncpa [#allocation4], 0 }
   0x3   :  { %13 = vsyncpa [#allocation9], 0  ;;  %s475_s15 = smov [#allocation2]   ;;  %s476_s17 = smov [#allocation5]  }
   0x4   :  { %s20_s16 = sshll.u32 %s475_s15, 4  ;;  %s31_s18 = sshll.u32 %s476_s17, 4  ;;  %s21_s16 = int_to_ptr.vmem [resolvable:$true] %s20_s16  ;;  %s507_s18 = int_to_ptr.vmem [resolvable:$true] %s31_s18 }
   0x5   :  { %s379_s21 = scalar_lea.hbm %s565_s0, 16 }
   0x6   :  { %p380_p0 = scmp.ne.s32.totalorder %s565_s0, %s379_s21  ;;  %p383_p1 = scmp.lt.u32.totalorder %s379_s21, %s565_s0 }
   0x8   :  { %p385_p2 = pnand %p383_p1, %p380_p0 }
   0xa   :  { %388 = shalt.err (!%p385_p2)
}
   0xb   :  { %s389_s26 = scalar_lea.vmem %s21_s16, 16  ;;  %s393_s27 = scalar_lea.vmem %s21_s16, 32 }
   0xc   :  { %p390_p3 = scmp.ne.s32.totalorder %s21_s16, %s389_s26  ;;  %p394_p4 = scmp.lt.s32.totalorder %s21_s16, %s21_s16 }
   0xd   :  { %p395_p5 = scmp.lt.s32.totalorder %s393_s27, %s389_s26 }
   0xf   :  { %p396_p6 = por %p395_p5, %p394_p4 }
  0x11   :  { %p397_p7 = pnand %p396_p6, %p390_p3 }
  0x13   :  { %400 = shalt.err (!%p397_p7)
}
  0x14   :  { %23 = dma.hbm_to_vmem [thread:$0]  %s565_s0, 16, %s21_s16, [#allocation3]  }
  0x15   :  { %s401_s6 = scalar_lea.hbm %s567_s2, 8192 }
  0x16   :  { %p402_p8 = scmp.ne.s32.totalorder %s567_s2, %s401_s6  ;;  %p405_p9 = scmp.lt.u32.totalorder %s401_s6, %s567_s2 }
  0x18   :  { %p407_p10 = pnand %p405_p9, %p402_p8 }
  0x1a   :  { %410 = shalt.err (!%p407_p10)
}
  0x1b   :  { %s411_s11 = scalar_lea.vmem %s507_s18, 8192  ;;  %p416_p12 = scmp.lt.s32.totalorder %s507_s18, %s507_s18 }
  0x1c   :  { %p412_p11 = scmp.ne.s32.totalorder %s507_s18, %s411_s11  ;;  %p417_p13 = scmp.lt.s32.totalorder %s411_s11, %s411_s11 }
  0x1e   :  { %p418_p0 = por %p417_p13, %p416_p12 }
  0x20   :  { %p419_p1 = pnand %p418_p0, %p412_p11 }
  0x22   :  { %422 = shalt.err (!%p419_p1)
}
  0x23   :  { %s477_s0 = smov 128   ;;  %s478_s12 = smov 8  }
  0x24   :  { %37 = dma.hbm_to_vmem [thread:$0]  %s567_s2, 8192, %s507_s18, [#allocation6], %s477_s0, %s477_s0, %s478_s12  }
  0x25   :  { %467 = dma.done.wait [#allocation3], 16  }
  0x26   :  { %468 = vsyncadd [#allocation3], 4294967280 }
  0x27   :  { %469 = dma.done.wait [#allocation6], 8192  }
  0x28   :  { %470 = vsyncadd [#allocation6], 4294959104  ;;  %v479_v0 = vmov 0.0   ;;  %v50_v1 = vld [vmem:[#allocation5] sm:$0xff]  ;;  %v51_v2 = vld [vmem:[#allocation5 + $0x8] sm:$0xff]  ;;  %s480_s2 = smov [#allocation7]  }
  0x29   :  { %48 = vst [vmem:[#allocation7] sm:$0x1] %v479_v0  ;;  %49 = vst [vmem:[#allocation8] sm:$0x1] %v479_v0  ;;  %v52_v3 = vld [vmem:[#allocation5 + $0x10] sm:$0xff]  ;;  %v53_v4 = vld [vmem:[#allocation5 + $0x18] sm:$0xff]  ;;  %v115_v5 = vadd.f32 %v51_v2, %v50_v1  ;;  %v187_v6 = vmul.f32 %v50_v1, %v50_v1  ;;  %v188_v7 = vmul.f32 %v51_v2, %v51_v2 }
  0x2a   :  { %v189_v8 = vmul.f32 %v52_v3, %v52_v3  ;;  %v54_v9 = vld [vmem:[#allocation5 + $0x20] sm:$0xff]  ;;  %v190_v11 = vmul.f32 %v53_v4, %v53_v4  ;;  %v55_v13 = vld [vmem:[#allocation5 + $0x28] sm:$0xff]  ;;  %v56_v17 = vld [vmem:[#allocation5 + $0x30] sm:$0xff]  ;;  %s346_s15 = sshll.u32 %s480_s2, 4  ;;  %s481_s18 = smov [#allocation8]   ;;  %s347_s15 = int_to_ptr.vmem [resolvable:$true] %s346_s15 }
  0x2b   :  { %v116_v10 = vadd.f32 %v115_v5, %v52_v3  ;;  %v251_v12 = vadd.f32 %v188_v7, %v187_v6  ;;  %v191_v15 = vmul.f32 %v54_v9, %v54_v9  ;;  %v192_v19 = vmul.f32 %v55_v13, %v55_v13  ;;  %v57_v21 = vld [vmem:[#allocation5 + $0x38] sm:$0xff]  ;;  %v58_v25 = vld [vmem:[#allocation5 + $0x40] sm:$0xff]  ;;  %v59_v29 = vld [vmem:[#allocation5 + $0x48] sm:$0xff]  ;;  %s356_s19 = sshll.u32 %s481_s18, 4  ;;  %s423_s20 = scalar_lea.vmem %s347_s15, 16  ;;  %s357_s19 = int_to_ptr.vmem [resolvable:$true] %s356_s19 }
  0x2c   :  { %v193_v23 = vmul.f32 %v56_v17, %v56_v17  ;;  %v194_v27 = vmul.f32 %v57_v21, %v57_v21  ;;  %v195_v31 = vmul.f32 %v58_v25, %v58_v25  ;;  %v60_v33 = vld [vmem:[#allocation5 + $0x50] sm:$0xff]  ;;  %v196_v35 = vmul.f32 %v59_v29, %v59_v29  ;;  %v61_v37 = vld [vmem:[#allocation5 + $0x58] sm:$0xff]  ;;  %v62_v41 = vld [vmem:[#allocation5 + $0x60] sm:$0xff]  ;;  %p424_p2 = scmp.ne.s32.totalorder %s347_s15, %s423_s20  ;;  %s427_s21 = scalar_lea.vmem %s347_s15, 32 }
  0x2d   :  { %v117_v14 = vadd.f32 %v116_v10, %v53_v4  ;;  %v252_v16 = vadd.f32 %v251_v12, %v189_v8  ;;  %v197_v39 = vmul.f32 %v60_v33, %v60_v33  ;;  %v198_v43 = vmul.f32 %v61_v37, %v61_v37  ;;  %v63_v45 = vld [vmem:[#allocation5 + $0x68] sm:$0xff]  ;;  %v64_v49 = vld [vmem:[#allocation5 + $0x70] sm:$0xff]  ;;  %v65_v53 = vld [vmem:[#allocation5 + $0x78] sm:$0xff]  ;;  %p428_p3 = scmp.lt.s32.totalorder %s347_s15, %s347_s15  ;;  %p429_p4 = scmp.lt.s32.totalorder %s427_s21, %s423_s20 }
  0x2e   :  { %v199_v47 = vmul.f32 %v62_v41, %v62_v41  ;;  %v200_v51 = vmul.f32 %v63_v45, %v63_v45  ;;  %v201_v55 = vmul.f32 %v64_v49, %v64_v49  ;;  %v66_v57 = vld [vmem:[#allocation5 + $0x80] sm:$0xff]  ;;  %v202_v59 = vmul.f32 %v65_v53, %v65_v53  ;;  %v67_v61 = vld [vmem:[#allocation5 + $0x88] sm:$0xff]  ;;  %v68_v1 = vld [vmem:[#allocation5 + $0x90] sm:$0xff] }
  0x2f   :  { %v118_v18 = vadd.f32 %v117_v14, %v54_v9  ;;  %v253_v20 = vadd.f32 %v252_v16, %v190_v11  ;;  %v203_v63 = vmul.f32 %v66_v57, %v66_v57  ;;  %v204_v3 = vmul.f32 %v67_v61, %v67_v61  ;;  %v69_v5 = vld [vmem:[#allocation5 + $0x98] sm:$0xff]  ;;  %v70_v9 = vld [vmem:[#allocation5 + $0xa0] sm:$0xff]  ;;  %p430_p5 = por %p429_p4, %p428_p3 }
  0x30   :  { %v205_v7 = vmul.f32 %v68_v1, %v68_v1  ;;  %v206_v11 = vmul.f32 %v69_v5, %v69_v5 }
  0x31   :  { %v119_v22 = vadd.f32 %v118_v18, %v55_v13  ;;  %v254_v24 = vadd.f32 %v253_v20, %v191_v15  ;;  %v71_v13 = vld [vmem:[#allocation5 + $0xa8] sm:$0xff]  ;;  %v207_v15 = vmul.f32 %v70_v9, %v70_v9  ;;  %p431_p6 = pnand %p430_p5, %p424_p2 }
  0x33   :  { %v120_v26 = vadd.f32 %v119_v22, %v56_v17  ;;  %v255_v28 = vadd.f32 %v254_v24, %v192_v19  ;;  %v72_v17 = vld [vmem:[#allocation5 + $0xb0] sm:$0xff]  ;;  %v208_v19 = vmul.f32 %v71_v13, %v71_v13 }
  0x35   :  { %v121_v30 = vadd.f32 %v120_v26, %v57_v21  ;;  %v256_v32 = vadd.f32 %v255_v28, %v193_v23  ;;  %v73_v21 = vld [vmem:[#allocation5 + $0xb8] sm:$0xff]  ;;  %v209_v23 = vmul.f32 %v72_v17, %v72_v17 }
  0x37   :  { %v122_v34 = vadd.f32 %v121_v30, %v58_v25  ;;  %v257_v36 = vadd.f32 %v256_v32, %v194_v27  ;;  %v74_v25 = vld [vmem:[#allocation5 + $0xc0] sm:$0xff]  ;;  %v210_v27 = vmul.f32 %v73_v21, %v73_v21 }
  0x39   :  { %v123_v38 = vadd.f32 %v122_v34, %v59_v29  ;;  %v258_v40 = vadd.f32 %v257_v36, %v195_v31  ;;  %v75_v29 = vld [vmem:[#allocation5 + $0xc8] sm:$0xff]  ;;  %v211_v31 = vmul.f32 %v74_v25, %v74_v25 }
  0x3b   :  { %v124_v42 = vadd.f32 %v123_v38, %v60_v33  ;;  %v259_v44 = vadd.f32 %v258_v40, %v196_v35  ;;  %v76_v33 = vld [vmem:[#allocation5 + $0xd0] sm:$0xff]  ;;  %v212_v35 = vmul.f32 %v75_v29, %v75_v29 }
  0x3d   :  { %v125_v46 = vadd.f32 %v124_v42, %v61_v37  ;;  %v260_v48 = vadd.f32 %v259_v44, %v197_v39  ;;  %v77_v37 = vld [vmem:[#allocation5 + $0xd8] sm:$0xff]  ;;  %v213_v39 = vmul.f32 %v76_v33, %v76_v33 }
  0x3f   :  { %v126_v50 = vadd.f32 %v125_v46, %v62_v41  ;;  %v261_v52 = vadd.f32 %v260_v48, %v198_v43  ;;  %v78_v41 = vld [vmem:[#allocation5 + $0xe0] sm:$0xff]  ;;  %v214_v43 = vmul.f32 %v77_v37, %v77_v37 }
  0x41   :  { %v127_v54 = vadd.f32 %v126_v50, %v63_v45  ;;  %v262_v56 = vadd.f32 %v261_v52, %v199_v47  ;;  %v79_v45 = vld [vmem:[#allocation5 + $0xe8] sm:$0xff]  ;;  %v215_v47 = vmul.f32 %v78_v41, %v78_v41 }
  0x43   :  { %v128_v58 = vadd.f32 %v127_v54, %v64_v49  ;;  %v263_v60 = vadd.f32 %v262_v56, %v200_v51  ;;  %v80_v49 = vld [vmem:[#allocation5 + $0xf0] sm:$0xff]  ;;  %v216_v51 = vmul.f32 %v79_v45, %v79_v45 }
  0x45   :  { %v129_v62 = vadd.f32 %v128_v58, %v65_v53  ;;  %v264_v0 = vadd.f32 %v263_v60, %v201_v55  ;;  %v81_v53 = vld [vmem:[#allocation5 + $0xf8] sm:$0xff]  ;;  %v217_v55 = vmul.f32 %v80_v49, %v80_v49 }
  0x47   :  { %v130_v2 = vadd.f32 %v129_v62, %v66_v57  ;;  %v265_v4 = vadd.f32 %v264_v0, %v202_v59  ;;  %v82_v57 = vld [vmem:[#allocation5 + $0x100] sm:$0xff]  ;;  %v218_v59 = vmul.f32 %v81_v53, %v81_v53 }
  0x49   :  { %v131_v6 = vadd.f32 %v130_v2, %v67_v61  ;;  %v266_v8 = vadd.f32 %v265_v4, %v203_v63  ;;  %v83_v61 = vld [vmem:[#allocation5 + $0x108] sm:$0xff]  ;;  %v219_v63 = vmul.f32 %v82_v57, %v82_v57 }
  0x4b   :  { %v132_v10 = vadd.f32 %v131_v6, %v68_v1  ;;  %v267_v12 = vadd.f32 %v266_v8, %v204_v3  ;;  %v84_v1 = vld [vmem:[#allocation5 + $0x110] sm:$0xff]  ;;  %v220_v3 = vmul.f32 %v83_v61, %v83_v61 }
  0x4d   :  { %v133_v14 = vadd.f32 %v132_v10, %v69_v5  ;;  %v268_v16 = vadd.f32 %v267_v12, %v205_v7  ;;  %v85_v5 = vld [vmem:[#allocation5 + $0x118] sm:$0xff]  ;;  %v221_v7 = vmul.f32 %v84_v1, %v84_v1 }
  0x4f   :  { %v134_v18 = vadd.f32 %v133_v14, %v70_v9  ;;  %v269_v20 = vadd.f32 %v268_v16, %v206_v11  ;;  %v86_v9 = vld [vmem:[#allocation5 + $0x120] sm:$0xff]  ;;  %v222_v11 = vmul.f32 %v85_v5, %v85_v5 }
  0x51   :  { %v135_v22 = vadd.f32 %v134_v18, %v71_v13  ;;  %v270_v24 = vadd.f32 %v269_v20, %v207_v15  ;;  %v87_v13 = vld [vmem:[#allocation5 + $0x128] sm:$0xff]  ;;  %v223_v15 = vmul.f32 %v86_v9, %v86_v9 }
  0x53   :  { %v136_v26 = vadd.f32 %v135_v22, %v72_v17  ;;  %v271_v28 = vadd.f32 %v270_v24, %v208_v19  ;;  %v88_v17 = vld [vmem:[#allocation5 + $0x130] sm:$0xff]  ;;  %v224_v19 = vmul.f32 %v87_v13, %v87_v13 }
  0x55   :  { %v137_v30 = vadd.f32 %v136_v26, %v73_v21  ;;  %v272_v32 = vadd.f32 %v271_v28, %v209_v23  ;;  %v89_v21 = vld [vmem:[#allocation5 + $0x138] sm:$0xff]  ;;  %v225_v23 = vmul.f32 %v88_v17, %v88_v17 }
  0x57   :  { %v138_v34 = vadd.f32 %v137_v30, %v74_v25  ;;  %v273_v36 = vadd.f32 %v272_v32, %v210_v27  ;;  %v90_v25 = vld [vmem:[#allocation5 + $0x140] sm:$0xff]  ;;  %v226_v27 = vmul.f32 %v89_v21, %v89_v21 }
  0x59   :  { %v139_v38 = vadd.f32 %v138_v34, %v75_v29  ;;  %v274_v40 = vadd.f32 %v273_v36, %v211_v31  ;;  %v91_v29 = vld [vmem:[#allocation5 + $0x148] sm:$0xff]  ;;  %v227_v31 = vmul.f32 %v90_v25, %v90_v25 }
  0x5b   :  { %v140_v42 = vadd.f32 %v139_v38, %v76_v33  ;;  %v275_v44 = vadd.f32 %v274_v40, %v212_v35  ;;  %v92_v33 = vld [vmem:[#allocation5 + $0x150] sm:$0xff]  ;;  %v228_v35 = vmul.f32 %v91_v29, %v91_v29 }
  0x5d   :  { %v141_v46 = vadd.f32 %v140_v42, %v77_v37  ;;  %v276_v48 = vadd.f32 %v275_v44, %v213_v39  ;;  %v93_v37 = vld [vmem:[#allocation5 + $0x158] sm:$0xff]  ;;  %v229_v39 = vmul.f32 %v92_v33, %v92_v33 }
  0x5f   :  { %v142_v50 = vadd.f32 %v141_v46, %v78_v41  ;;  %v277_v52 = vadd.f32 %v276_v48, %v214_v43  ;;  %v94_v41 = vld [vmem:[#allocation5 + $0x160] sm:$0xff]  ;;  %v230_v43 = vmul.f32 %v93_v37, %v93_v37 }
  0x61   :  { %v143_v54 = vadd.f32 %v142_v50, %v79_v45  ;;  %v278_v56 = vadd.f32 %v277_v52, %v215_v47  ;;  %v95_v45 = vld [vmem:[#allocation5 + $0x168] sm:$0xff]  ;;  %v231_v47 = vmul.f32 %v94_v41, %v94_v41 }
  0x63   :  { %v144_v58 = vadd.f32 %v143_v54, %v80_v49  ;;  %v279_v60 = vadd.f32 %v278_v56, %v216_v51  ;;  %v96_v49 = vld [vmem:[#allocation5 + $0x170] sm:$0xff]  ;;  %v232_v51 = vmul.f32 %v95_v45, %v95_v45 }
  0x65   :  { %v145_v62 = vadd.f32 %v144_v58, %v81_v53  ;;  %v280_v0 = vadd.f32 %v279_v60, %v217_v55  ;;  %v97_v53 = vld [vmem:[#allocation5 + $0x178] sm:$0xff]  ;;  %v233_v55 = vmul.f32 %v96_v49, %v96_v49 }
  0x67   :  { %v146_v2 = vadd.f32 %v145_v62, %v82_v57  ;;  %v281_v4 = vadd.f32 %v280_v0, %v218_v59  ;;  %v98_v57 = vld [vmem:[#allocation5 + $0x180] sm:$0xff]  ;;  %v234_v59 = vmul.f32 %v97_v53, %v97_v53 }
  0x69   :  { %v147_v6 = vadd.f32 %v146_v2, %v83_v61  ;;  %v282_v8 = vadd.f32 %v281_v4, %v219_v63  ;;  %v99_v61 = vld [vmem:[#allocation5 + $0x188] sm:$0xff]  ;;  %v235_v63 = vmul.f32 %v98_v57, %v98_v57 }
  0x6b   :  { %v148_v10 = vadd.f32 %v147_v6, %v84_v1  ;;  %v283_v12 = vadd.f32 %v282_v8, %v220_v3  ;;  %v100_v1 = vld [vmem:[#allocation5 + $0x190] sm:$0xff]  ;;  %v236_v3 = vmul.f32 %v99_v61, %v99_v61 }
  0x6d   :  { %v149_v14 = vadd.f32 %v148_v10, %v85_v5  ;;  %v284_v16 = vadd.f32 %v283_v12, %v221_v7  ;;  %v101_v5 = vld [vmem:[#allocation5 + $0x198] sm:$0xff]  ;;  %v237_v7 = vmul.f32 %v100_v1, %v100_v1 }
  0x6f   :  { %v150_v18 = vadd.f32 %v149_v14, %v86_v9  ;;  %v285_v20 = vadd.f32 %v284_v16, %v222_v11  ;;  %v102_v9 = vld [vmem:[#allocation5 + $0x1a0] sm:$0xff]  ;;  %v238_v11 = vmul.f32 %v101_v5, %v101_v5 }
  0x71   :  { %v151_v22 = vadd.f32 %v150_v18, %v87_v13  ;;  %v286_v24 = vadd.f32 %v285_v20, %v223_v15  ;;  %v103_v13 = vld [vmem:[#allocation5 + $0x1a8] sm:$0xff]  ;;  %v239_v15 = vmul.f32 %v102_v9, %v102_v9 }
  0x73   :  { %v152_v26 = vadd.f32 %v151_v22, %v88_v17  ;;  %v287_v28 = vadd.f32 %v286_v24, %v224_v19  ;;  %v104_v17 = vld [vmem:[#allocation5 + $0x1b0] sm:$0xff]  ;;  %v240_v19 = vmul.f32 %v103_v13, %v103_v13 }
  0x75   :  { %v153_v30 = vadd.f32 %v152_v26, %v89_v21  ;;  %v288_v32 = vadd.f32 %v287_v28, %v225_v23  ;;  %v105_v21 = vld [vmem:[#allocation5 + $0x1b8] sm:$0xff]  ;;  %v241_v23 = vmul.f32 %v104_v17, %v104_v17 }
  0x77   :  { %v154_v34 = vadd.f32 %v153_v30, %v90_v25  ;;  %v289_v36 = vadd.f32 %v288_v32, %v226_v27  ;;  %v106_v25 = vld [vmem:[#allocation5 + $0x1c0] sm:$0xff]  ;;  %v242_v27 = vmul.f32 %v105_v21, %v105_v21 }
  0x79   :  { %v155_v38 = vadd.f32 %v154_v34, %v91_v29  ;;  %v290_v40 = vadd.f32 %v289_v36, %v227_v31  ;;  %v107_v29 = vld [vmem:[#allocation5 + $0x1c8] sm:$0xff]  ;;  %v243_v31 = vmul.f32 %v106_v25, %v106_v25 }
  0x7b   :  { %v156_v42 = vadd.f32 %v155_v38, %v92_v33  ;;  %v291_v44 = vadd.f32 %v290_v40, %v228_v35  ;;  %v108_v33 = vld [vmem:[#allocation5 + $0x1d0] sm:$0xff]  ;;  %v244_v35 = vmul.f32 %v107_v29, %v107_v29 }
  0x7d   :  { %v157_v46 = vadd.f32 %v156_v42, %v93_v37  ;;  %v292_v48 = vadd.f32 %v291_v44, %v229_v39  ;;  %v109_v37 = vld [vmem:[#allocation5 + $0x1d8] sm:$0xff]  ;;  %v245_v39 = vmul.f32 %v108_v33, %v108_v33 }
  0x7f   :  { %v158_v50 = vadd.f32 %v157_v46, %v94_v41  ;;  %v293_v52 = vadd.f32 %v292_v48, %v230_v43  ;;  %v110_v41 = vld [vmem:[#allocation5 + $0x1e0] sm:$0xff]  ;;  %v246_v43 = vmul.f32 %v109_v37, %v109_v37 }
  0x81   :  { %v159_v54 = vadd.f32 %v158_v50, %v95_v45  ;;  %v294_v56 = vadd.f32 %v293_v52, %v231_v47  ;;  %v111_v45 = vld [vmem:[#allocation5 + $0x1e8] sm:$0xff]  ;;  %v247_v47 = vmul.f32 %v110_v41, %v110_v41 }
  0x83   :  { %v160_v58 = vadd.f32 %v159_v54, %v96_v49  ;;  %v295_v60 = vadd.f32 %v294_v56, %v232_v51  ;;  %v112_v49 = vld [vmem:[#allocation5 + $0x1f0] sm:$0xff]  ;;  %v248_v51 = vmul.f32 %v111_v45, %v111_v45 }
  0x85   :  { %v161_v62 = vadd.f32 %v160_v58, %v97_v53  ;;  %v296_v0 = vadd.f32 %v295_v60, %v233_v55  ;;  %v113_v53 = vld [vmem:[#allocation5 + $0x1f8] sm:$0xff]  ;;  %v249_v55 = vmul.f32 %v112_v49, %v112_v49 }
  0x86   :  { %v250_v58 = vmul.f32 %v113_v53, %v113_v53 }
  0x87   :  { %v162_v2 = vadd.f32 %v161_v62, %v98_v57  ;;  %v297_v4 = vadd.f32 %v296_v0, %v234_v59 }
  0x89   :  { %v163_v6 = vadd.f32 %v162_v2, %v99_v61  ;;  %v298_v8 = vadd.f32 %v297_v4, %v235_v63 }
  0x8b   :  { %v164_v10 = vadd.f32 %v163_v6, %v100_v1  ;;  %v299_v12 = vadd.f32 %v298_v8, %v236_v3 }
  0x8d   :  { %v165_v14 = vadd.f32 %v164_v10, %v101_v5  ;;  %v300_v16 = vadd.f32 %v299_v12, %v237_v7  ;;  %v114_v7 = vld [vmem:[#allocation7] sm:$0x1]  ;;  %v186_v12 = vld [vmem:[#allocation8] sm:$0x1] }
  0x8f   :  { %v166_v18 = vadd.f32 %v165_v14, %v102_v9  ;;  %v301_v20 = vadd.f32 %v300_v16, %v238_v11 }
  0x91   :  { %v167_v22 = vadd.f32 %v166_v18, %v103_v13  ;;  %v302_v24 = vadd.f32 %v301_v20, %v239_v15 }
  0x93   :  { %v168_v26 = vadd.f32 %v167_v22, %v104_v17  ;;  %v303_v28 = vadd.f32 %v302_v24, %v240_v19  ;;  %v331_v22 = vld [vmem:[#allocation2] sm:$0x1] }
  0x95   :  { %v169_v30 = vadd.f32 %v168_v26, %v105_v21  ;;  %v304_v32 = vadd.f32 %v303_v28, %v241_v23 }
  0x97   :  { %v170_v34 = vadd.f32 %v169_v30, %v106_v25  ;;  %v305_v36 = vadd.f32 %v304_v32, %v242_v27  ;;  %v336_v25 = vld [vmem:[%s566_s1] sm:$0x1] }
  0x99   :  { %v171_v38 = vadd.f32 %v170_v34, %v107_v29  ;;  %v306_v40 = vadd.f32 %v305_v36, %v243_v31 }
  0x9b   :  { %v172_v42 = vadd.f32 %v171_v38, %v108_v33  ;;  %v307_v44 = vadd.f32 %v306_v40, %v244_v35 }
  0x9d   :  { %v173_v46 = vadd.f32 %v172_v42, %v109_v37  ;;  %v308_v48 = vadd.f32 %v307_v44, %v245_v39 }
  0x9f   :  { %v174_v50 = vadd.f32 %v173_v46, %v110_v41  ;;  %v309_v52 = vadd.f32 %v308_v48, %v246_v43 }
  0xa1   :  { %v175_v54 = vadd.f32 %v174_v50, %v111_v45  ;;  %v310_v56 = vadd.f32 %v309_v52, %v247_v47 }
  0xa3   :  { %v176_v57 = vadd.f32 %v175_v54, %v112_v49  ;;  %v311_v59 = vadd.f32 %v310_v56, %v248_v51 }
  0xa5   :  { %v177_v60 = vadd.f32 %v176_v57, %v113_v53  ;;  %v312_v61 = vadd.f32 %v311_v59, %v249_v55 }
  0xa7   :  { %v178_v62 = vrot.slane %v177_v60, 4  ;;  %v313_v63 = vadd.f32 %v312_v61, %v250_v58 }
  0xa9   :  { %v179_v0 = vadd.f32 %v178_v62, %v177_v60  ;;  %v314_v1 = vrot.slane %v313_v63, 4 }
  0xab   :  { %v180_v2 = vrot.slane %v179_v0, 2  ;;  %v315_v3 = vadd.f32 %v314_v1, %v313_v63 }
  0xad   :  { %v181_v4 = vadd.f32 %v180_v2, %v179_v0  ;;  %v316_v5 = vrot.slane %v315_v3, 2 }
  0xaf   :  { %v182_v6 = vrot.slane %v181_v4, 1  ;;  %v317_v8 = vadd.f32 %v316_v5, %v315_v3 }
  0xb1   :  { %v183_v9 = vadd.f32 %v182_v6, %v181_v4  ;;  %v318_v10 = vrot.slane %v317_v8, 1 }
  0xb3   :  { %v184_v11 = vadd.f32 %v183_v9, %v114_v7  ;;  %v319_v13 = vadd.f32 %v318_v10, %v317_v8 }
  0xb5   :  { %185 = vst [vmem:[#allocation7] sm:$0x1] %v184_v11  ;;  %v320_v14 = vadd.f32 %v319_v13, %v186_v12 }
  0xb7   :  { %321 = vst [vmem:[#allocation8] sm:$0x1] %v320_v14 }
  0xbc   :  { %v325_v15 = vld [vmem:[#allocation7] sm:$0x1] }
  0xbd   :  { %v326_v16 = vmul.f32 0.001953125, %v325_v15 }
  0xbe   :  { %v327_v17 = vld [vmem:[#allocation8] sm:$0x1] }
  0xbf   :  { %v329_v18 = vmul.f32 %v326_v16, %v326_v16  ;;  %v328_v19 = vmul.f32 0.001953125, %v327_v17 }
  0xc1   :  { %v330_v20 = vsub.f32 %v328_v19, %v329_v18 }
  0xc3   :  { %v332_v21 = vadd.f32 1e-05, %v330_v20 }
  0xc5   :  { %377 = vrsqrt.f32 %v332_v21 }
  0xcf   :  { %v378_v23 = vpop.eup %377 }
  0xd0   :  { %v334_v24 = vmul.f32 %v378_v23, %v331_v22 }
  0xd2   :  { %335 = vst [vmem:[#allocation7] sm:$0x1] %v334_v24  ;;  %v337_v26 = vmul.f32 %v334_v24, %v326_v16 }
  0xd3   :  { %434 = shalt.err (!%p431_p6)
}
  0xd4   :  { %s435_s24 = scalar_lea.hbm %s568_s3, 16 }
  0xd5   :  { %p436_p7 = scmp.ne.s32.totalorder %s568_s3, %s435_s24  ;;  %p439_p8 = scmp.lt.u32.totalorder %s435_s24, %s568_s3 }
  0xd7   :  { %p441_p9 = pnand %p439_p8, %p436_p7 }
  0xd9   :  { %444 = shalt.err (!%p441_p9)
}
  0xda   :  { %349 = dma.vmem_to_hbm [thread:$0]  %s347_s15, 16, %s568_s3, [#allocation4]   ;;  %v338_v27 = vsub.f32 %v336_v25, %v337_v26 }
  0xdb   :  { %s445_s30 = scalar_lea.vmem %s357_s19, 16  ;;  %s449_s5 = scalar_lea.vmem %s357_s19, 32 }
  0xdc   :  { %339 = vst [vmem:[#allocation8] sm:$0x1] %v338_v27  ;;  %p446_p10 = scmp.ne.s32.totalorder %s357_s19, %s445_s30  ;;  %p450_p11 = scmp.lt.s32.totalorder %s357_s19, %s357_s19 }
  0xdd   :  { %p451_p12 = scmp.lt.s32.totalorder %s449_s5, %s445_s30 }
  0xdf   :  { %p452_p13 = por %p451_p12, %p450_p11 }
  0xe1   :  { %p453_p0 = pnand %p452_p13, %p446_p10 }
  0xe3   :  { %456 = shalt.err (!%p453_p0)
}
  0xe4   :  { %s457_s8 = scalar_lea.hbm %s569_s4, 16 }
  0xe5   :  { %p458_p1 = scmp.ne.s32.totalorder %s569_s4, %s457_s8  ;;  %p461_p2 = scmp.lt.u32.totalorder %s457_s8, %s569_s4 }
  0xe7   :  { %p463_p3 = pnand %p461_p2, %p458_p1 }
  0xe9   :  { %466 = shalt.err (!%p463_p3)
}
  0xea   :  { %359 = dma.vmem_to_hbm [thread:$0]  %s357_s19, 16, %s569_s4, [#allocation9]  }
  0xeb   :  { %471 = dma.done.wait [#allocation4], 16  }
  0xec   :  { %472 = vsyncadd [#allocation4], 4294967280 }
  0xed   :  { %473 = dma.done.wait [#allocation9], 16  }
  0xee   :  { %474 = vsyncadd [#allocation9], 4294967280 }
  0xef   :  { %366 = vsyncpa [#allocation3], 1 }
  0xf0   :  { %367 = vsyncpa [#allocation6], 1 }
  0xf1   :  { %368 = vsyncpa [#allocation4], 1 }
  0xf2   :  { %369 = vsyncpa [#allocation9], 1 }

</bundles_post_ra>
